<compile_context>
chip_gen: v5e
topology: v5e:2x2
jax: 0.10.0
libtpu: 0.0.40
codegen_flags: <defaults>
</compile_context>

<pallas_src>
import jax
import jax.numpy as jnp
from jax.experimental import pallas as pl
from jax.experimental.pallas import tpu as pltpu


def _linear_dropout_add_kernel(x_ref, w_ref, b_ref, res_ref, o_ref):
    # x_ref:   (TILE_M, K)  fp32 activation tile
    # w_ref:   (K, N)       fp32 weight, pre-transposed (x @ w); VMEM-resident across steps
    # b_ref:   (1, N)       fp32 bias row
    # res_ref: (TILE_M, N)  fp32 residual tile (HBM-aliased with the output block)
    y = jnp.dot(x_ref[...], w_ref[...], preferred_element_type=jnp.float32)
    # Dropout(p=0.1) -> identity in inference mode.
    o_ref[...] = (y + b_ref[...] + res_ref[...]).astype(o_ref.dtype)


def _pick_tile_m(M):
    # Prefer 192 (384 -> 2 parallel steps, one per v7x TensorCore), fall back to
    # smaller multiples of 8 that divide M exactly.
    for t in (192, 128, 64, 32, 16, 8):
        if M % t == 0:
            return t
    return M


@jax.jit
def linear_dropout_add(x145, x113, weight_t, bias):
    """x145, x113: (B, S, H) fp32; weight_t: (H_in, H_out) fp32 (already transposed);
    bias: (H_out,) fp32."""
    B, S, H_in = x145.shape
    K, H_out = weight_t.shape
    assert K == H_in

    M = B * S
    x2d = x145.reshape(M, H_in)
    r2d = x113.reshape(M, H_out)
    b2d = bias.reshape(1, H_out)

    tile_m = _pick_tile_m(M)
    grid = (M // tile_m,)

    flops = 2 * M * H_in * H_out
    bytes_accessed = (
        x2d.size * 4           # x (fp32)
        + weight_t.size * 4    # weight (fp32)
        + b2d.size * 4         # bias (fp32)
        + r2d.size * 4         # residual (fp32)
        + M * H_out * 4        # output (fp32)
    )

    out = pl.pallas_call(
        _linear_dropout_add_kernel,
        out_shape=jax.ShapeDtypeStruct((M, H_out), x145.dtype),
        grid=grid,
        in_specs=[
            pl.BlockSpec((tile_m, H_in), lambda i: (i, 0)),   # x row-tile
            pl.BlockSpec((K, H_out), lambda i: (0, 0)),       # full weight (resident)
            pl.BlockSpec((1, H_out), lambda i: (0, 0)),       # bias row (resident)
            pl.BlockSpec((tile_m, H_out), lambda i: (i, 0)),  # residual row-tile
        ],
        out_specs=pl.BlockSpec((tile_m, H_out), lambda i: (i, 0)),
        input_output_aliases={3: 0},  # residual buffer reused as the output buffer
        compiler_params=pltpu.CompilerParams(
            dimension_semantics=("parallel",),
        ),
        cost_estimate=pl.CostEstimate(
            flops=flops, transcendentals=0, bytes_accessed=bytes_accessed
        ),
    )(x2d, weight_t, b2d, r2d)

    return out.reshape(B, S, H_out)


def reference(x145, x113, weight, bias):
    """Pure fp32 reference of the PyTorch module (Linear + Dropout(eval) + add)."""
    y = jnp.einsum("bsh,oh->bso", x145, weight) + bias
    return y + x113


if __name__ == "__main__":
    key = jax.random.PRNGKey(0)
    k1, k2, k3, k4 = jax.random.split(key, 4)

    B, S, H = 1, 384, 256
    x145 = jax.random.normal(k1, (B, S, H), dtype=jnp.float32)
    x113 = jax.random.normal(k2, (B, S, H), dtype=jnp.float32)
    # Deterministic params (Linear(256, 256) shapes, torch convention: (out, in))
    weight = jax.random.normal(k3, (H, H), dtype=jnp.float32) * 0.02
    bias = jax.random.normal(k4, (H,), dtype=jnp.float32) * 0.02

    # Fold the transpose into the stored parameter once, outside the hot path.
    weight_t = jnp.asarray(weight.T)

    # Compute the fp32 reference first (keeps the comparison independent of the
    # residual buffer being aliased into the kernel output).
    ref_f32 = reference(x145, x113, weight, bias)

    out = linear_dropout_add(x145, x113, weight_t, bias)
    out = jax.block_until_ready(out)
    assert out.shape == (B, S, H)

    assert jnp.allclose(out, ref_f32, atol=3e-2, rtol=3e-2), "mismatch vs fp32 reference"

    print("KERNEL_OK")
</pallas_src>

<mosaic_0001>
module attributes {stable_mosaic.version = 11 : i64} {
  func.func @_linear_dropout_add_kernel(%arg0: i32, %arg1: memref<192x256xf32, #tpu.memory_space<vmem>>, %arg2: memref<256x256xf32, #tpu.memory_space<vmem>>, %arg3: memref<1x256xf32, #tpu.memory_space<vmem>>, %arg4: memref<192x256xf32, #tpu.memory_space<vmem>>, %arg5: memref<192x256xf32, #tpu.memory_space<vmem>>) attributes {dimension_semantics = [#tpu.dimension_semantics<parallel>], iteration_bounds = array<i64: 2>, scalar_prefetch = 0 : i64, scratch_operands = 0 : i64, tpu.core_type = #tpu.core_type<tc>, window_params = [{transform_indices = @transform_0, window_bounds = array<i64: 192, 256>}, {pipeline_mode = #tpu.pipeline_mode<synchronous>, transform_indices = @transform_1, window_bounds = array<i64: 256, 256>}, {pipeline_mode = #tpu.pipeline_mode<synchronous>, transform_indices = @transform_2, window_bounds = array<i64: 1, 256>}, {transform_indices = @transform_3, window_bounds = array<i64: 192, 256>}, {transform_indices = @transform_4, window_bounds = array<i64: 192, 256>}]} {
    %c0 = arith.constant 0 : index
    %c0_0 = arith.constant 0 : index
    %0 = vector.load %arg1[%c0, %c0_0] : memref<192x256xf32, #tpu.memory_space<vmem>>, vector<192x256xf32>
    %c0_1 = arith.constant 0 : index
    %c0_2 = arith.constant 0 : index
    %1 = vector.load %arg2[%c0_1, %c0_2] : memref<256x256xf32, #tpu.memory_space<vmem>>, vector<256x256xf32>
    %cst = arith.constant dense<0.000000e+00> : vector<192x256xf32>
    %2 = tpu.matmul %0, %1, %cst {dimension_numbers = #tpu.dot_dimension_numbers<[1], [0], [0], [1], [0, 0, 1, 1], [], []>} : vector<192x256xf32>, vector<256x256xf32>, vector<192x256xf32> -> vector<192x256xf32>
    %c0_3 = arith.constant 0 : index
    %c0_4 = arith.constant 0 : index
    %3 = vector.load %arg3[%c0_3, %c0_4] : memref<1x256xf32, #tpu.memory_space<vmem>>, vector<1x256xf32>
    %4 = vector.broadcast %3 : vector<1x256xf32> to vector<192x256xf32>
    %5 = arith.addf %2, %4 : vector<192x256xf32>
    %c0_5 = arith.constant 0 : index
    %c0_6 = arith.constant 0 : index
    %6 = vector.load %arg4[%c0_5, %c0_6] : memref<192x256xf32, #tpu.memory_space<vmem>>, vector<192x256xf32>
    %7 = arith.addf %5, %6 : vector<192x256xf32>
    %c0_7 = arith.constant 0 : index
    %c0_8 = arith.constant 0 : index
    %8 = vector.load %arg5[%c0_7, %c0_8] : memref<192x256xf32, #tpu.memory_space<vmem>>, vector<192x256xf32>
    tpu.vector_store %arg5[%c0_7, %c0_8], %7 {strides = array<i32>} : memref<192x256xf32, #tpu.memory_space<vmem>>, vector<192x256xf32>,
    return
  }
  func.func @transform_0(%arg0: i32) -> (i32, i32) {
    %c0_i32 = arith.constant 0 : i32
    %c0_i32_0 = arith.constant 0 : i32
    return %arg0, %c0_i32 : i32, i32
  }
  func.func @transform_1(%arg0: i32) -> (i32, i32) {
    %c0_i32 = arith.constant 0 : i32
    %c0_i32_0 = arith.constant 0 : i32
    %c0_i32_1 = arith.constant 0 : i32
    return %c0_i32, %c0_i32_0 : i32, i32
  }
  func.func @transform_2(%arg0: i32) -> (i32, i32) {
    %c0_i32 = arith.constant 0 : i32
    %c0_i32_0 = arith.constant 0 : i32
    %c0_i32_1 = arith.constant 0 : i32
    return %c0_i32, %c0_i32_0 : i32, i32
  }
  func.func @transform_3(%arg0: i32) -> (i32, i32) {
    %c0_i32 = arith.constant 0 : i32
    %c0_i32_0 = arith.constant 0 : i32
    return %arg0, %c0_i32 : i32, i32
  }
  func.func @transform_4(%arg0: i32) -> (i32, i32) {
    %c0_i32 = arith.constant 0 : i32
    %c0_i32_0 = arith.constant 0 : i32
    return %arg0, %c0_i32 : i32, i32
  }
}

</mosaic_0001>

<bundles_post_ra>
// kernel: linear_dropout_add.1
= control target key start
LH: loop header
LB: loop body
LE: loop exit
PB: predicated region body
PF: predicated region fallthrough
CT: control target
= control target key end

     0   :  { %9 = vsyncpa [#allocation3], 0  ;;  %s1057_s15 = smov 0   ;;  %s1438_s0 = inlined_call_operand.vmem [shape: f32[384,256], index: 0, kind: input, shape index: {}]   ;;  %s1439_s1 = inlined_call_operand.hbm [shape: f32[256,256], index: 1, kind: input, shape index: {}]   ;;  %s1440_s2 = inlined_call_operand.vmem [shape: f32[1,256], index: 2, kind: input, shape index: {}]   ;;  %s1441_s3 = inlined_call_operand.vmem [shape: f32[384,256], index: 3, kind: input, shape index: {}, may-alias: {3,4}]   ;;  %s1442_s4 = inlined_call_operand.vmem [shape: f32[384,256], index: 4, kind: output, shape index: {}, may-alias: {3,4}]  }
   0x1 LB: > { %s151_s18 = sshll.u32 %s1439_s1, 4  ;;  %s948_s19 = sadd.s32 4294967295, %s1027_s15   ;;  %s1027_s15 = sphi %s1057_s15, %s15_s15   ;;  %s152_s18 = int_to_ptr.hbm [resolvable:$true] %s151_s18 }
   0x2   : > { %p950_p0 = scmp.ge.s32.totalorder %s1027_s15, 1  ;;  %p140_p1 = scmp.lt.s32.totalorder %s1027_s15, 3 }
   0x3   : > { %p974_p2 = scmp.eq.s32.totalorder %s948_s19, 0  ;;  %s1029_s20 = smov [#allocation2]  }
   0x4   : > { %p141_p3 = pnand %p950_p0, %p140_p1  ;;  %s153_s21 = sshll.u32 %s1029_s20, 4  ;;  %s154_s21 = int_to_ptr.vmem [resolvable:$true] %s153_s21 }
   0x5   : > { %s1030_s22 = smov 256   ;;  %s1031_s23 = smov 16  }
   0x6   : > { %p970_p4 = pneg %p141_p3  ;;  %192 = sbr.rel (%p141_p3) target bundleno = 367 (0x16f), region = 36 }
   0x8   : > { %p971_p5 = pnand %p974_p2, %p970_p4 }
   0xa   : > { %973 = dma.hbm_to_vmem [thread:$0]  (!%p971_p5), %s152_s18, 8192, %s154_s21, [#allocation3], %s1030_s22, %s1030_s22, %s1031_s23  }
   0xb   : > { %1022 = dma.done.wait (%p974_p2), [#allocation3], 8192  }
   0xc   : > { %1024 = vsyncadd (%p974_p2), [#allocation3], 4294959104  ;;  %v327_v0 = vld [vmem:[#allocation2 + $0xf8] sm:$0xff]  ;;  %v325_v1 = vld [vmem:[#allocation2 + $0xe8] sm:$0xff]  ;;  %s1072_s24 = smul.u32 24, %s948_s19 }
   0xd   : > { %v359_v2 = vld [vmem:[#allocation2 + $0x1f8] sm:$0xff]  ;;  %544 = vmatpush.msra.mxu2 %v327_v0  ;;  %v357_v3 = vld [vmem:[#allocation2 + $0x1e8] sm:$0xff]  ;;  %v326_v4 = vld [vmem:[#allocation2 + $0xf0] sm:$0xff] }
   0xe   : > { %633 = vmatpush.msra.mxu3 %v359_v2  ;;  %v323_v5 = vld [vmem:[#allocation2 + $0xd8] sm:$0xff]  ;;  %366 = vmatpush.msra.mxu0 %v326_v4  ;;  %v324_v7 = vld [vmem:[#allocation2 + $0xe0] sm:$0xff]  ;;  %v321_v8 = vld [vmem:[#allocation2 + $0xc8] sm:$0xff]  ;;  %p228_p6 = scmp.lt.s32.totalorder %s1072_s24, 47 }
   0xf   : > { %v355_v6 = vld [vmem:[#allocation2 + $0x1d8] sm:$0xff]  ;;  %545 = vmatpush.msra.mxu2 %v325_v1  ;;  %v358_v9 = vld [vmem:[#allocation2 + $0x1f0] sm:$0xff]  ;;  %v353_v10 = vld [vmem:[#allocation2 + $0x1c8] sm:$0xff] }
  0x10   : > { %634 = vmatpush.msra.mxu3 %v357_v3  ;;  %367 = vmatpush.msra.mxu0 %v324_v7  ;;  %v322_v11 = vld [vmem:[#allocation2 + $0xd0] sm:$0xff]  ;;  %v356_v12 = vld [vmem:[#allocation2 + $0x1e0] sm:$0xff]  ;;  %v319_v15 = vld [vmem:[#allocation2 + $0xb8] sm:$0xff]  ;;  %s1444_s24 = smov (!%p228_p6, %s1072_s24), 47 }
  0x11   : > { %455 = vmatpush.msra.mxu1 %v358_v9  ;;  %546 = vmatpush.msra.mxu2 %v323_v5  ;;  %v320_v13 = vld [vmem:[#allocation2 + $0xc0] sm:$0xff]  ;;  %v354_v14 = vld [vmem:[#allocation2 + $0x1d0] sm:$0xff]  ;;  %v351_v16 = vld [vmem:[#allocation2 + $0x1b8] sm:$0xff]  ;;  %s1078_s25 = sshll.u32 %s1444_s24, 4 }
  0x12   : > { %635 = vmatpush.msra.mxu3 %v355_v6  ;;  %368 = vmatpush.msra.mxu0 %v322_v11  ;;  %v318_v17 = vld [vmem:[#allocation2 + $0xb0] sm:$0xff]  ;;  %v352_v18 = vld [vmem:[#allocation2 + $0x1c0] sm:$0xff]  ;;  %v317_v19 = vld [vmem:[#allocation2 + $0xa8] sm:$0xff]  ;;  %s1084_s28 = scalar_lea.vmem %s1438_s0, %s1078_s25  ;;  %s1129_s7 = scalar_lea.vmem %s1441_s3, %s1078_s25 }
  0x13   : > { %456 = vmatpush.msra.mxu1 %v356_v12  ;;  %547 = vmatpush.msra.mxu2 %v321_v8  ;;  %v349_v20 = vld [vmem:[#allocation2 + $0x1a8] sm:$0xff]  ;;  %v316_v21 = vld [vmem:[#allocation2 + $0xa0] sm:$0xff]  ;;  %v350_v22 = vld [vmem:[#allocation2 + $0x1b0] sm:$0xff]  ;;  %s1268_s10 = scalar_lea.vmem %s1442_s4, %s1078_s25 }
  0x14   : > { %636 = vmatpush.msra.mxu3 %v353_v10  ;;  %369 = vmatpush.msra.mxu0 %v320_v13  ;;  %v315_v23 = vld [vmem:[#allocation2 + $0x98] sm:$0xff]  ;;  %v314_v25 = vld [vmem:[#allocation2 + $0x90] sm:$0xff]  ;;  %v348_v26 = vld [vmem:[#allocation2 + $0x1a0] sm:$0xff] }
  0x15   : > { %457 = vmatpush.msra.mxu1 %v354_v14  ;;  %548 = vmatpush.msra.mxu2 %v319_v15  ;;  %v347_v24 = vld [vmem:[#allocation2 + $0x198] sm:$0xff]  ;;  %v313_v27 = vld [vmem:[#allocation2 + $0x88] sm:$0xff]  ;;  %v312_v29 = vld [vmem:[#allocation2 + $0x80] sm:$0xff] }
  0x16   : > { %637 = vmatpush.msra.mxu3 %v351_v16  ;;  %370 = vmatpush.msra.mxu0 %v318_v17  ;;  %v345_v28 = vld [vmem:[#allocation2 + $0x188] sm:$0xff]  ;;  %v346_v30 = vld [vmem:[#allocation2 + $0x190] sm:$0xff]  ;;  %v311_v31 = vld [vmem:[#allocation2 + $0x78] sm:$0xff] }
  0x17   : > { %458 = vmatpush.msra.mxu1 %v352_v18  ;;  %549 = vmatpush.msra.mxu2 %v317_v19  ;;  %v343_v32 = vld [vmem:[#allocation2 + $0x178] sm:$0xff]  ;;  %v310_v33 = vld [vmem:[#allocation2 + $0x70] sm:$0xff]  ;;  %v344_v34 = vld [vmem:[#allocation2 + $0x180] sm:$0xff] }
  0x18   : > { %638 = vmatpush.msra.mxu3 %v349_v20  ;;  %371 = vmatpush.msra.mxu0 %v316_v21  ;;  %v309_v35 = vld [vmem:[#allocation2 + $0x68] sm:$0xff]  ;;  %v308_v37 = vld [vmem:[#allocation2 + $0x60] sm:$0xff]  ;;  %v342_v38 = vld [vmem:[#allocation2 + $0x170] sm:$0xff] }
  0x19   : > { %459 = vmatpush.msra.mxu1 %v350_v22  ;;  %550 = vmatpush.msra.mxu2 %v315_v23  ;;  %v341_v36 = vld [vmem:[#allocation2 + $0x168] sm:$0xff]  ;;  %v307_v39 = vld [vmem:[#allocation2 + $0x58] sm:$0xff]  ;;  %v306_v41 = vld [vmem:[#allocation2 + $0x50] sm:$0xff] }
  0x1a   : > { %639 = vmatpush.msra.mxu3 %v347_v24  ;;  %372 = vmatpush.msra.mxu0 %v314_v25  ;;  %v339_v40 = vld [vmem:[#allocation2 + $0x158] sm:$0xff]  ;;  %v340_v42 = vld [vmem:[#allocation2 + $0x160] sm:$0xff]  ;;  %v305_v43 = vld [vmem:[#allocation2 + $0x48] sm:$0xff] }
  0x1b   : > { %460 = vmatpush.msra.mxu1 %v348_v26  ;;  %551 = vmatpush.msra.mxu2 %v313_v27  ;;  %v337_v44 = vld [vmem:[#allocation2 + $0x148] sm:$0xff]  ;;  %v304_v45 = vld [vmem:[#allocation2 + $0x40] sm:$0xff]  ;;  %v338_v46 = vld [vmem:[#allocation2 + $0x150] sm:$0xff] }
  0x1c   : > { %640 = vmatpush.msra.mxu3 %v345_v28  ;;  %373 = vmatpush.msra.mxu0 %v312_v29  ;;  %v303_v47 = vld [vmem:[#allocation2 + $0x38] sm:$0xff]  ;;  %v302_v49 = vld [vmem:[#allocation2 + $0x30] sm:$0xff]  ;;  %v336_v50 = vld [vmem:[#allocation2 + $0x140] sm:$0xff] }
  0x1d   : > { %461 = vmatpush.msra.mxu1 %v346_v30  ;;  %552 = vmatpush.msra.mxu2 %v311_v31  ;;  %v335_v48 = vld [vmem:[#allocation2 + $0x138] sm:$0xff]  ;;  %v301_v51 = vld [vmem:[#allocation2 + $0x28] sm:$0xff]  ;;  %v300_v53 = vld [vmem:[#allocation2 + $0x20] sm:$0xff] }
  0x1e   : > { %641 = vmatpush.msra.mxu3 %v343_v32  ;;  %374 = vmatpush.msra.mxu0 %v310_v33  ;;  %v333_v52 = vld [vmem:[#allocation2 + $0x128] sm:$0xff]  ;;  %v334_v54 = vld [vmem:[#allocation2 + $0x130] sm:$0xff]  ;;  %v299_v55 = vld [vmem:[#allocation2 + $0x18] sm:$0xff] }
  0x1f   : > { %462 = vmatpush.msra.mxu1 %v344_v34  ;;  %553 = vmatpush.msra.mxu2 %v309_v35  ;;  %v331_v56 = vld [vmem:[#allocation2 + $0x118] sm:$0xff]  ;;  %v298_v57 = vld [vmem:[#allocation2 + $0x10] sm:$0xff]  ;;  %v332_v58 = vld [vmem:[#allocation2 + $0x120] sm:$0xff] }
  0x20   : > { %642 = vmatpush.msra.mxu3 %v341_v36  ;;  %375 = vmatpush.msra.mxu0 %v308_v37  ;;  %v297_v59 = vld [vmem:[#allocation2 + $0x8] sm:$0xff]  ;;  %v248_v61 = vld [vmem:[%s1084_s28] sm:$0xff]  ;;  %v330_v0 = vld [vmem:[#allocation2 + $0x110] sm:$0xff] }
  0x21   : > { %463 = vmatpush.msra.mxu1 %v342_v38  ;;  %554 = vmatpush.msra.mxu2 %v307_v39  ;;  %v329_v60 = vld [vmem:[#allocation2 + $0x108] sm:$0xff]  ;;  %v296_v63 = vld [vmem:[#allocation2] sm:$0xff]  ;;  %v250_v2 = vld [vmem:[%s1084_s28 + $0x10] sm:$0xff] }
  0x22   : > { %643 = vmatpush.msra.mxu3 %v339_v40  ;;  %376 = vmatpush.msra.mxu0 %v306_v41  ;;  %v249_v62 = vld [vmem:[%s1084_s28 + $0x8] sm:$0xff]  ;;  %v328_v1 = vld [vmem:[#allocation2 + $0x100] sm:$0xff]  ;;  %v251_v3 = vld [vmem:[%s1084_s28 + $0x18] sm:$0xff] }
  0x23   : > { %464 = vmatpush.msra.mxu1 %v340_v42  ;;  %555 = vmatpush.msra.mxu2 %v305_v43  ;;  %v252_v4 = vld [vmem:[%s1084_s28 + $0x20] sm:$0xff]  ;;  %v253_v5 = vld [vmem:[%s1084_s28 + $0x28] sm:$0xff]  ;;  %v254_v6 = vld [vmem:[%s1084_s28 + $0x30] sm:$0xff] }
  0x24   : > { %644 = vmatpush.msra.mxu3 %v337_v44  ;;  %377 = vmatpush.msra.mxu0 %v304_v45  ;;  %v255_v7 = vld [vmem:[%s1084_s28 + $0x38] sm:$0xff]  ;;  %v256_v8 = vld [vmem:[%s1084_s28 + $0x40] sm:$0xff]  ;;  %v257_v9 = vld [vmem:[%s1084_s28 + $0x48] sm:$0xff] }
  0x25   : > { %465 = vmatpush.msra.mxu1 %v338_v46  ;;  %556 = vmatpush.msra.mxu2 %v303_v47  ;;  %v258_v10 = vld [vmem:[%s1084_s28 + $0x50] sm:$0xff]  ;;  %v259_v11 = vld [vmem:[%s1084_s28 + $0x58] sm:$0xff]  ;;  %v260_v12 = vld [vmem:[%s1084_s28 + $0x60] sm:$0xff] }
  0x26   : > { %645 = vmatpush.msra.mxu3 %v335_v48  ;;  %378 = vmatpush.msra.mxu0 %v302_v49  ;;  %v261_v13 = vld [vmem:[%s1084_s28 + $0x68] sm:$0xff]  ;;  %v262_v14 = vld [vmem:[%s1084_s28 + $0x70] sm:$0xff]  ;;  %v263_v15 = vld [vmem:[%s1084_s28 + $0x78] sm:$0xff] }
  0x27   : > { %466 = vmatpush.msra.mxu1 %v336_v50  ;;  %557 = vmatpush.msra.mxu2 %v301_v51  ;;  %v264_v16 = vld [vmem:[%s1084_s28 + $0x80] sm:$0xff]  ;;  %v265_v17 = vld [vmem:[%s1084_s28 + $0x88] sm:$0xff]  ;;  %v266_v18 = vld [vmem:[%s1084_s28 + $0x90] sm:$0xff] }
  0x28   : > { %646 = vmatpush.msra.mxu3 %v333_v52  ;;  %379 = vmatpush.msra.mxu0 %v300_v53  ;;  %v267_v19 = vld [vmem:[%s1084_s28 + $0x98] sm:$0xff]  ;;  %v268_v20 = vld [vmem:[%s1084_s28 + $0xa0] sm:$0xff]  ;;  %v269_v21 = vld [vmem:[%s1084_s28 + $0xa8] sm:$0xff] }
  0x29   : > { %467 = vmatpush.msra.mxu1 %v334_v54  ;;  %558 = vmatpush.msra.mxu2 %v299_v55  ;;  %v270_v22 = vld [vmem:[%s1084_s28 + $0xb0] sm:$0xff]  ;;  %v271_v23 = vld [vmem:[%s1084_s28 + $0xb8] sm:$0xff]  ;;  %v272_v24 = vld [vmem:[%s1084_s28 + $0xc0] sm:$0xff] }
  0x2a   : > { %647 = vmatpush.msra.mxu3 %v331_v56  ;;  %380 = vmatpush.msra.mxu0 %v298_v57  ;;  %v273_v25 = vld [vmem:[%s1084_s28 + $0xc8] sm:$0xff]  ;;  %v274_v26 = vld [vmem:[%s1084_s28 + $0xd0] sm:$0xff]  ;;  %v275_v27 = vld [vmem:[%s1084_s28 + $0xd8] sm:$0xff] }
  0x2b   : > { %468 = vmatpush.msra.mxu1 %v332_v58  ;;  %559 = vmatpush.msra.mxu2 %v297_v59  ;;  %v276_v28 = vld [vmem:[%s1084_s28 + $0xe0] sm:$0xff]  ;;  %v277_v29 = vld [vmem:[%s1084_s28 + $0xe8] sm:$0xff]  ;;  %v278_v30 = vld [vmem:[%s1084_s28 + $0xf0] sm:$0xff] }
  0x2c   : > { %648 = vmatpush.msra.mxu3 %v329_v60  ;;  %560 = vmatmul.f32.vlgmr.msra.gmra.mxu2 %v248_v61  ;;  %v279_v31 = vld [vmem:[%s1084_s28 + $0xf8] sm:$0xff]  ;;  %v360_v32 = vld [vmem:[%s1440_s2] sm:$0x3]  ;;  %v281_v35 = vld [vmem:[%s1084_s28 + $0x108] sm:$0xff] }
  0x2d   : > { %649 = vmatmul.f32.vlgmr.msra.gmra.mxu3 %v249_v62  ;;  %381 = vmatpush.msra.mxu0 %v296_v63  ;;  %v1121_v33 = vperm.slane %v360_v32, 0  ;;  %v280_v34 = vld [vmem:[%s1084_s28 + $0x100] sm:$0xff]  ;;  %v1132_v38 = vperm.slane %v360_v32, 1  ;;  %v1136_v41 = vld [vmem:[%s1129_s7 + $0x10] sm:$0xff]  ;;  %v1139_v42 = vld [vmem:[%s1129_s7 + $0x18] sm:$0xff] }
  0x2e   : > { %469 = vmatpush.msra.mxu1 %v330_v0  ;;  %382 = vmatmul.f32.vlgmr.msra.gmra.mxu0 %v248_v61  ;;  %v722_v39 = vld [vmem:[%s1129_s7] sm:$0xff]  ;;  %v1145_v44 = vld [vmem:[%s1129_s7 + $0x28] sm:$0xff]  ;;  %v1148_v45 = vld [vmem:[%s1129_s7 + $0x30] sm:$0xff] }
  0x2f   : > { %v1142_v43 = vld [vmem:[%s1129_s7 + $0x20] sm:$0xff]  ;;  %v1151_v46 = vld [vmem:[%s1129_s7 + $0x38] sm:$0xff]  ;;  %v1157_v48 = vld [vmem:[%s1129_s7 + $0x48] sm:$0xff] }
  0x30   : > { %470 = vmatpush.msra.mxu1 %v328_v1  ;;  %v1154_v47 = vld [vmem:[%s1129_s7 + $0x40] sm:$0xff]  ;;  %v1160_v49 = vld [vmem:[%s1129_s7 + $0x50] sm:$0xff]  ;;  %v1163_v50 = vld [vmem:[%s1129_s7 + $0x58] sm:$0xff] }
  0x31   : > { %471 = vmatmul.f32.vlgmr.msra.gmra.mxu1 %v249_v62  ;;  %v1166_v51 = vld [vmem:[%s1129_s7 + $0x60] sm:$0xff]  ;;  %v1169_v52 = vld [vmem:[%s1129_s7 + $0x68] sm:$0xff]  ;;  %v1172_v53 = vld [vmem:[%s1129_s7 + $0x70] sm:$0xff] }
  0x32   : > { %v1175_v54 = vld [vmem:[%s1129_s7 + $0x78] sm:$0xff]  ;;  %v1178_v55 = vld [vmem:[%s1129_s7 + $0x80] sm:$0xff]  ;;  %v1181_v56 = vld [vmem:[%s1129_s7 + $0x88] sm:$0xff] }
  0x33   : > { %v1184_v57 = vld [vmem:[%s1129_s7 + $0x90] sm:$0xff]  ;;  %v1187_v58 = vld [vmem:[%s1129_s7 + $0x98] sm:$0xff]  ;;  %v1190_v59 = vld [vmem:[%s1129_s7 + $0xa0] sm:$0xff] }
  0x34   : > { %563 = vmatmul.f32.gmra.mxu2 %v250_v2  ;;  %v1193_v60 = vld [vmem:[%s1129_s7 + $0xa8] sm:$0xff]  ;;  %v1196_v61 = vld [vmem:[%s1129_s7 + $0xb0] sm:$0xff]  ;;  %v1199_v62 = vld [vmem:[%s1129_s7 + $0xb8] sm:$0xff] }
  0x35   : > { %652 = vmatmul.f32.gmra.mxu3 %v251_v3  ;;  %v1202_v63 = vld [vmem:[%s1129_s7 + $0xc0] sm:$0xff]  ;;  %v1205_v0 = vld [vmem:[%s1129_s7 + $0xc8] sm:$0xff]  ;;  %v1208_v1 = vld [vmem:[%s1129_s7 + $0xd0] sm:$0xff] }
  0x36   : > { %385 = vmatmul.f32.gmra.mxu0 %v250_v2  ;;  %v1211_v2 = vld [vmem:[%s1129_s7 + $0xd8] sm:$0xff] }
  0x39   : > { %474 = vmatmul.f32.gmra.mxu1 %v251_v3  ;;  %v1214_v3 = vld [vmem:[%s1129_s7 + $0xe0] sm:$0xff] }
  0x3c   : > { %566 = vmatmul.f32.gmra.mxu2 %v252_v4 }
  0x3d   : > { %655 = vmatmul.f32.gmra.mxu3 %v253_v5 }
  0x3e   : > { %388 = vmatmul.f32.gmra.mxu0 %v252_v4  ;;  %v1217_v4 = vld [vmem:[%s1129_s7 + $0xe8] sm:$0xff] }
  0x41   : > { %477 = vmatmul.f32.gmra.mxu1 %v253_v5  ;;  %v1220_v5 = vld [vmem:[%s1129_s7 + $0xf0] sm:$0xff] }
  0x44   : > { %569 = vmatmul.f32.gmra.mxu2 %v254_v6 }
  0x45   : > { %658 = vmatmul.f32.gmra.mxu3 %v255_v7 }
  0x46   : > { %391 = vmatmul.f32.gmra.mxu0 %v254_v6  ;;  %v1223_v6 = vld [vmem:[%s1129_s7 + $0xf8] sm:$0xff] }
  0x49   : > { %480 = vmatmul.f32.gmra.mxu1 %v255_v7  ;;  %v1226_v7 = vld [vmem:[%s1129_s7 + $0x100] sm:$0xff] }
  0x4c   : > { %572 = vmatmul.f32.gmra.mxu2 %v256_v8 }
  0x4d   : > { %661 = vmatmul.f32.gmra.mxu3 %v257_v9 }
  0x4e   : > { %394 = vmatmul.f32.gmra.mxu0 %v256_v8  ;;  %v1229_v8 = vld [vmem:[%s1129_s7 + $0x108] sm:$0xff] }
  0x51   : > { %483 = vmatmul.f32.gmra.mxu1 %v257_v9  ;;  %v1232_v9 = vld [vmem:[%s1129_s7 + $0x110] sm:$0xff] }
  0x54   : > { %575 = vmatmul.f32.gmra.mxu2 %v258_v10 }
  0x55   : > { %664 = vmatmul.f32.gmra.mxu3 %v259_v11 }
  0x56   : > { %397 = vmatmul.f32.gmra.mxu0 %v258_v10  ;;  %v1235_v10 = vld [vmem:[%s1129_s7 + $0x118] sm:$0xff] }
  0x59   : > { %486 = vmatmul.f32.gmra.mxu1 %v259_v11  ;;  %v1238_v11 = vld [vmem:[%s1129_s7 + $0x120] sm:$0xff] }
  0x5c   : > { %578 = vmatmul.f32.gmra.mxu2 %v260_v12 }
  0x5d   : > { %667 = vmatmul.f32.gmra.mxu3 %v261_v13 }
  0x5e   : > { %400 = vmatmul.f32.gmra.mxu0 %v260_v12  ;;  %v1241_v12 = vld [vmem:[%s1129_s7 + $0x128] sm:$0xff] }
  0x61   : > { %489 = vmatmul.f32.gmra.mxu1 %v261_v13  ;;  %v1244_v13 = vld [vmem:[%s1129_s7 + $0x130] sm:$0xff] }
  0x64   : > { %581 = vmatmul.f32.gmra.mxu2 %v262_v14 }
  0x65   : > { %670 = vmatmul.f32.gmra.mxu3 %v263_v15 }
  0x66   : > { %403 = vmatmul.f32.gmra.mxu0 %v262_v14  ;;  %v1247_v14 = vld [vmem:[%s1129_s7 + $0x138] sm:$0xff] }
  0x69   : > { %492 = vmatmul.f32.gmra.mxu1 %v263_v15  ;;  %v1250_v15 = vld [vmem:[%s1129_s7 + $0x140] sm:$0xff] }
  0x6c   : > { %584 = vmatmul.f32.gmra.mxu2 %v264_v16 }
  0x6d   : > { %673 = vmatmul.f32.gmra.mxu3 %v265_v17 }
  0x6e   : > { %406 = vmatmul.f32.gmra.mxu0 %v264_v16  ;;  %v1253_v16 = vld [vmem:[%s1129_s7 + $0x148] sm:$0xff] }
  0x71   : > { %495 = vmatmul.f32.gmra.mxu1 %v265_v17 }
  0x74   : > { %587 = vmatmul.f32.gmra.mxu2 %v266_v18 }
  0x75   : > { %676 = vmatmul.f32.gmra.mxu3 %v267_v19 }
  0x76   : > { %409 = vmatmul.f32.gmra.mxu0 %v266_v18  ;;  %v1256_v18 = vld [vmem:[%s1129_s7 + $0x150] sm:$0xff] }
  0x79   : > { %498 = vmatmul.f32.gmra.mxu1 %v267_v19  ;;  %v1259_v19 = vld [vmem:[%s1129_s7 + $0x158] sm:$0xff] }
  0x7c   : > { %590 = vmatmul.f32.gmra.mxu2 %v268_v20 }
  0x7d   : > { %679 = vmatmul.f32.gmra.mxu3 %v269_v21 }
  0x7e   : > { %412 = vmatmul.f32.gmra.mxu0 %v268_v20  ;;  %v1262_v20 = vld [vmem:[%s1129_s7 + $0x160] sm:$0xff] }
  0x81   : > { %501 = vmatmul.f32.gmra.mxu1 %v269_v21 }
  0x84   : > { %593 = vmatmul.f32.gmra.mxu2 %v270_v22 }
  0x85   : > { %682 = vmatmul.f32.gmra.mxu3 %v271_v23 }
  0x86   : > { %415 = vmatmul.f32.gmra.mxu0 %v270_v22 }
  0x89   : > { %504 = vmatmul.f32.gmra.mxu1 %v271_v23  ;;  %v1271_v23 = vld [vmem:[%s1129_s7 + $0x168] sm:$0xff] }
  0x8c   : > { %596 = vmatmul.f32.gmra.mxu2 %v272_v24 }
  0x8d   : > { %685 = vmatmul.f32.gmra.mxu3 %v273_v25 }
  0x8e   : > { %418 = vmatmul.f32.gmra.mxu0 %v272_v24  ;;  %v1274_v24 = vld [vmem:[%s1129_s7 + $0x170] sm:$0xff] }
  0x91   : > { %507 = vmatmul.f32.gmra.mxu1 %v273_v25  ;;  %v1277_v25 = vld [vmem:[%s1129_s7 + $0x178] sm:$0xff] }
  0x94   : > { %599 = vmatmul.f32.gmra.mxu2 %v274_v26 }
  0x95   : > { %688 = vmatmul.f32.gmra.mxu3 %v275_v27 }
  0x96   : > { %421 = vmatmul.f32.gmra.mxu0 %v274_v26 }
  0x99   : > { %510 = vmatmul.f32.gmra.mxu1 %v275_v27 }
  0x9c   : > { %602 = vmatmul.f32.gmra.mxu2 %v276_v28 }
  0x9d   : > { %691 = vmatmul.f32.gmra.mxu3 %v277_v29 }
  0x9e   : > { %424 = vmatmul.f32.gmra.mxu0 %v276_v28  ;;  %v723_v28 = vld [vmem:[%s1129_s7 + $0x8] sm:$0xff] }
  0xa1   : > { %513 = vmatmul.f32.gmra.mxu1 %v277_v29  ;;  %v282_v29 = vld [vmem:[%s1084_s28 + $0x110] sm:$0xff] }
  0xa4   : > { %605 = vmatmul.f32.gmra.mxu2 %v278_v30 }
  0xa5   : > { %694 = vmatmul.f32.gmra.mxu3 %v279_v31 }
  0xa6   : > { %427 = vmatmul.f32.gmra.mxu0 %v278_v30  ;;  %v283_v30 = vld [vmem:[%s1084_s28 + $0x118] sm:$0xff] }
  0xa9   : > { %516 = vmatmul.f32.gmra.mxu1 %v279_v31 }
  0xab   : > { %v383_v36 = vpop.f32.mrf.mxu0 }
  0xac   : > { %608 = vmatmul.f32.gmra.mxu2 %v280_v34  ;;  %v384_v37 = vadd.f32 %v383_v36, %v1121_v33 }
  0xad   : > { %697 = vmatmul.f32.gmra.mxu3 %v281_v35 }
  0xae   : > { %v472_v40 = vpop.f32.mrf.mxu1  ;;  %430 = vmatmul.f32.gmra.mxu0 %v280_v34 }
  0xaf   : > { %v473_v17 = vadd.f32 %v472_v40, %v384_v37  ;;  %v561_v21 = vpop.f32.mrf.mxu2 }
  0xb0   : > { %v650_v22 = vpop.f32.mrf.mxu3  ;;  %v562_v26 = vadd.f32 %v561_v21, %v1132_v38 }
  0xb1   : > { %v770_v27 = vadd.f32 %v722_v39, %v473_v17  ;;  %519 = vmatmul.f32.gmra.mxu1 %v281_v35 }
  0xb2   : > { %v651_v31 = vadd.f32 %v650_v22, %v562_v26  ;;  %v284_v22 = vld [vmem:[%s1084_s28 + $0x120] sm:$0xff]  ;;  %v285_v26 = vld [vmem:[%s1084_s28 + $0x128] sm:$0xff] }
  0xb3   : > { %818 = vst [vmem:[%s1268_s10] sm:$0xff] %v770_v27  ;;  %v386_v32 = vpop.f32.mrf.mxu0 }
  0xb4   : > { %v771_v34 = vadd.f32 %v723_v28, %v651_v31  ;;  %611 = vmatmul.f32.gmra.mxu2 %v282_v29  ;;  %v387_v36 = vadd.f32 %v386_v32, %v1121_v33 }
  0xb5   : > { %700 = vmatmul.f32.gmra.mxu3 %v283_v30 }
  0xb6   : > { %v475_v37 = vpop.f32.mrf.mxu1  ;;  %433 = vmatmul.f32.gmra.mxu0 %v282_v29  ;;  %819 = vst [vmem:[%s1268_s10 + $0x8] sm:$0xff] %v771_v34 }
  0xb7   : > { %v476_v40 = vadd.f32 %v475_v37, %v387_v36  ;;  %v564_v39 = vpop.f32.mrf.mxu2 }
  0xb8   : > { %v653_v35 = vpop.f32.mrf.mxu3  ;;  %v565_v17 = vadd.f32 %v564_v39, %v1132_v38  ;;  %v287_v39 = vld [vmem:[%s1084_s28 + $0x138] sm:$0xff] }
  0xb9   : > { %v772_v21 = vadd.f32 %v1136_v41, %v476_v40  ;;  %522 = vmatmul.f32.gmra.mxu1 %v283_v30  ;;  %v286_v40 = vld [vmem:[%s1084_s28 + $0x130] sm:$0xff] }
  0xba   : > { %v654_v27 = vadd.f32 %v653_v35, %v565_v17 }
  0xbb   : > { %820 = vst [vmem:[%s1268_s10 + $0x10] sm:$0xff] %v772_v21  ;;  %v389_v28 = vpop.f32.mrf.mxu0 }
  0xbc   : > { %v773_v31 = vadd.f32 %v1139_v42, %v654_v27  ;;  %614 = vmatmul.f32.gmra.mxu2 %v284_v22  ;;  %v390_v29 = vadd.f32 %v389_v28, %v1121_v33 }
  0xbd   : > { %703 = vmatmul.f32.gmra.mxu3 %v285_v26 }
  0xbe   : > { %v478_v32 = vpop.f32.mrf.mxu1  ;;  %436 = vmatmul.f32.gmra.mxu0 %v284_v22  ;;  %821 = vst [vmem:[%s1268_s10 + $0x18] sm:$0xff] %v773_v31 }
  0xbf   : > { %v479_v34 = vadd.f32 %v478_v32, %v390_v29  ;;  %v567_v41 = vpop.f32.mrf.mxu2  ;;  %v288_v29 = vld [vmem:[%s1084_s28 + $0x140] sm:$0xff]  ;;  %v289_v32 = vld [vmem:[%s1084_s28 + $0x148] sm:$0xff] }
  0xc0   : > { %v656_v30 = vpop.f32.mrf.mxu3  ;;  %v568_v36 = vadd.f32 %v567_v41, %v1132_v38 }
  0xc1   : > { %v774_v37 = vadd.f32 %v1142_v43, %v479_v34  ;;  %525 = vmatmul.f32.gmra.mxu1 %v285_v26 }
  0xc2   : > { %v657_v42 = vadd.f32 %v656_v30, %v568_v36 }
  0xc3   : > { %822 = vst [vmem:[%s1268_s10 + $0x20] sm:$0xff] %v774_v37  ;;  %v392_v35 = vpop.f32.mrf.mxu0 }
  0xc4   : > { %v775_v17 = vadd.f32 %v1145_v44, %v657_v42  ;;  %617 = vmatmul.f32.gmra.mxu2 %v286_v40  ;;  %v393_v21 = vadd.f32 %v392_v35, %v1121_v33  ;;  %v290_v35 = vld [vmem:[%s1084_s28 + $0x150] sm:$0xff] }
  0xc5   : > { %706 = vmatmul.f32.gmra.mxu3 %v287_v39 }
  0xc6   : > { %v481_v22 = vpop.f32.mrf.mxu1  ;;  %439 = vmatmul.f32.gmra.mxu0 %v286_v40  ;;  %823 = vst [vmem:[%s1268_s10 + $0x28] sm:$0xff] %v775_v17  ;;  %v291_v17 = vld [vmem:[%s1084_s28 + $0x158] sm:$0xff] }
  0xc7   : > { %v482_v27 = vadd.f32 %v481_v22, %v393_v21  ;;  %v570_v43 = vpop.f32.mrf.mxu2 }
  0xc8   : > { %v659_v26 = vpop.f32.mrf.mxu3  ;;  %v571_v28 = vadd.f32 %v570_v43, %v1132_v38 }
  0xc9   : > { %v776_v31 = vadd.f32 %v1148_v45, %v482_v27  ;;  %528 = vmatmul.f32.gmra.mxu1 %v287_v39 }
  0xca   : > { %v660_v44 = vadd.f32 %v659_v26, %v571_v28 }
  0xcb   : > { %824 = vst [vmem:[%s1268_s10 + $0x30] sm:$0xff] %v776_v31  ;;  %v395_v34 = vpop.f32.mrf.mxu0 }
  0xcc   : > { %v777_v41 = vadd.f32 %v1151_v46, %v660_v44  ;;  %620 = vmatmul.f32.gmra.mxu2 %v288_v29  ;;  %v396_v30 = vadd.f32 %v395_v34, %v1121_v33  ;;  %v293_v44 = vld [vmem:[%s1084_s28 + $0x168] sm:$0xff] }
  0xcd   : > { %709 = vmatmul.f32.gmra.mxu3 %v289_v32 }
  0xce   : > { %v484_v36 = vpop.f32.mrf.mxu1  ;;  %442 = vmatmul.f32.gmra.mxu0 %v288_v29  ;;  %825 = vst [vmem:[%s1268_s10 + $0x38] sm:$0xff] %v777_v41 }
  0xcf   : > { %v485_v37 = vadd.f32 %v484_v36, %v396_v30  ;;  %v573_v45 = vpop.f32.mrf.mxu2 }
  0xd0   : > { %v662_v40 = vpop.f32.mrf.mxu3  ;;  %v574_v39 = vadd.f32 %v573_v45, %v1132_v38 }
  0xd1   : > { %v778_v42 = vadd.f32 %v1154_v47, %v485_v37  ;;  %531 = vmatmul.f32.gmra.mxu1 %v289_v32  ;;  %v292_v32 = vld [vmem:[%s1084_s28 + $0x160] sm:$0xff] }
  0xd2   : > { %v663_v46 = vadd.f32 %v662_v40, %v574_v39 }
  0xd3   : > { %826 = vst [vmem:[%s1268_s10 + $0x40] sm:$0xff] %v778_v42  ;;  %v398_v21 = vpop.f32.mrf.mxu0  ;;  %v294_v42 = vld [vmem:[%s1084_s28 + $0x170] sm:$0xff] }
  0xd4   : > { %v779_v22 = vadd.f32 %v1157_v48, %v663_v46  ;;  %623 = vmatmul.f32.gmra.mxu2 %v290_v35  ;;  %v399_v27 = vadd.f32 %v398_v21, %v1121_v33 }
  0xd5   : > { %712 = vmatmul.f32.gmra.mxu3 %v291_v17 }
  0xd6   : > { %v487_v43 = vpop.f32.mrf.mxu1  ;;  %445 = vmatmul.f32.gmra.mxu0 %v290_v35  ;;  %827 = vst [vmem:[%s1268_s10 + $0x48] sm:$0xff] %v779_v22  ;;  %v295_v35 = vld [vmem:[%s1084_s28 + $0x178] sm:$0xff] }
  0xd7   : > { %v488_v26 = vadd.f32 %v487_v43, %v399_v27  ;;  %v576_v47 = vpop.f32.mrf.mxu2 }
  0xd8   : > { %v665_v28 = vpop.f32.mrf.mxu3  ;;  %v577_v31 = vadd.f32 %v576_v47, %v1132_v38 }
  0xd9   : > { %v780_v29 = vadd.f32 %v1160_v49, %v488_v26  ;;  %534 = vmatmul.f32.gmra.mxu1 %v291_v17 }
  0xda   : > { %v666_v48 = vadd.f32 %v665_v28, %v577_v31 }
  0xdb   : > { %828 = vst [vmem:[%s1268_s10 + $0x50] sm:$0xff] %v780_v29  ;;  %v401_v34 = vpop.f32.mrf.mxu0 }
  0xdc   : > { %v781_v41 = vadd.f32 %v1163_v50, %v666_v48  ;;  %626 = vmatmul.f32.gmra.mxu2 %v292_v32  ;;  %v402_v30 = vadd.f32 %v401_v34, %v1121_v33 }
  0xdd   : > { %715 = vmatmul.f32.gmra.mxu3 %v293_v44 }
  0xde   : > { %v490_v36 = vpop.f32.mrf.mxu1  ;;  %448 = vmatmul.f32.gmra.mxu0 %v292_v32  ;;  %829 = vst [vmem:[%s1268_s10 + $0x58] sm:$0xff] %v781_v41 }
  0xdf   : > { %v491_v37 = vadd.f32 %v490_v36, %v402_v30  ;;  %v579_v49 = vpop.f32.mrf.mxu2 }
  0xe0   : > { %v668_v45 = vpop.f32.mrf.mxu3  ;;  %v580_v40 = vadd.f32 %v579_v49, %v1132_v38 }
  0xe1   : > { %v782_v39 = vadd.f32 %v1166_v51, %v491_v37  ;;  %537 = vmatmul.f32.gmra.mxu1 %v293_v44 }
  0xe2   : > { %v669_v50 = vadd.f32 %v668_v45, %v580_v40 }
  0xe3   : > { %830 = vst [vmem:[%s1268_s10 + $0x60] sm:$0xff] %v782_v39  ;;  %v404_v17 = vpop.f32.mrf.mxu0 }
  0xe4   : > { %v783_v46 = vadd.f32 %v1169_v52, %v669_v50  ;;  %629 = vmatmul.f32.gmra.mxu2 %v294_v42  ;;  %v405_v21 = vadd.f32 %v404_v17, %v1121_v33 }
  0xe5   : > { %718 = vmatmul.f32.gmra.mxu3 %v295_v35 }
  0xe6   : > { %v493_v22 = vpop.f32.mrf.mxu1  ;;  %451 = vmatmul.f32.gmra.mxu0 %v294_v42  ;;  %831 = vst [vmem:[%s1268_s10 + $0x68] sm:$0xff] %v783_v46 }
  0xe7   : > { %v494_v27 = vadd.f32 %v493_v22, %v405_v21  ;;  %v582_v43 = vpop.f32.mrf.mxu2 }
  0xe8   : > { %v671_v51 = vpop.f32.mrf.mxu3  ;;  %v583_v26 = vadd.f32 %v582_v43, %v1132_v38 }
  0xe9   : > { %v784_v47 = vadd.f32 %v1172_v53, %v494_v27  ;;  %540 = vmatmul.f32.gmra.mxu1 %v295_v35 }
  0xea   : > { %v672_v28 = vadd.f32 %v671_v51, %v583_v26 }
  0xeb   : > { %832 = vst [vmem:[%s1268_s10 + $0x70] sm:$0xff] %v784_v47  ;;  %v407_v52 = vpop.f32.mrf.mxu0 }
  0xec   : > { %v785_v31 = vadd.f32 %v1175_v54, %v672_v28  ;;  %v408_v29 = vadd.f32 %v407_v52, %v1121_v33 }
  0xee   : > { %v496_v32 = vpop.f32.mrf.mxu1  ;;  %833 = vst [vmem:[%s1268_s10 + $0x78] sm:$0xff] %v785_v31 }
  0xef   : > { %v497_v44 = vadd.f32 %v496_v32, %v408_v29  ;;  %v585_v48 = vpop.f32.mrf.mxu2 }
  0xf0   : > { %v674_v34 = vpop.f32.mrf.mxu3  ;;  %v586_v41 = vadd.f32 %v585_v48, %v1132_v38 }
  0xf1   : > { %v786_v30 = vadd.f32 %v1178_v55, %v497_v44 }
  0xf2   : > { %v675_v53 = vadd.f32 %v674_v34, %v586_v41 }
  0xf3   : > { %834 = vst [vmem:[%s1268_s10 + $0x80] sm:$0xff] %v786_v30  ;;  %v410_v36 = vpop.f32.mrf.mxu0 }
  0xf4   : > { %v787_v37 = vadd.f32 %v1181_v56, %v675_v53  ;;  %v411_v54 = vadd.f32 %v410_v36, %v1121_v33 }
  0xf6   : > { %v499_v49 = vpop.f32.mrf.mxu1  ;;  %835 = vst [vmem:[%s1268_s10 + $0x88] sm:$0xff] %v787_v37 }
  0xf7   : > { %v500_v45 = vadd.f32 %v499_v49, %v411_v54  ;;  %v588_v40 = vpop.f32.mrf.mxu2 }
  0xf8   : > { %v677_v39 = vpop.f32.mrf.mxu3  ;;  %v589_v42 = vadd.f32 %v588_v40, %v1132_v38 }
  0xf9   : > { %v788_v35 = vadd.f32 %v1184_v57, %v500_v45 }
  0xfa   : > { %v678_v50 = vadd.f32 %v677_v39, %v589_v42 }
  0xfb   : > { %836 = vst [vmem:[%s1268_s10 + $0x90] sm:$0xff] %v788_v35  ;;  %v413_v55 = vpop.f32.mrf.mxu0 }
  0xfc   : > { %v789_v17 = vadd.f32 %v1187_v58, %v678_v50  ;;  %v414_v56 = vadd.f32 %v413_v55, %v1121_v33 }
  0xfe   : > { %v502_v46 = vpop.f32.mrf.mxu1  ;;  %837 = vst [vmem:[%s1268_s10 + $0x98] sm:$0xff] %v789_v17 }
  0xff   : > { %v503_v21 = vadd.f32 %v502_v46, %v414_v56  ;;  %v591_v22 = vpop.f32.mrf.mxu2 }
 0x100   : > { %v680_v27 = vpop.f32.mrf.mxu3  ;;  %v592_v43 = vadd.f32 %v591_v22, %v1132_v38 }
 0x101   : > { %v790_v51 = vadd.f32 %v1190_v59, %v503_v21 }
 0x102   : > { %v681_v26 = vadd.f32 %v680_v27, %v592_v43 }
 0x103   : > { %838 = vst [vmem:[%s1268_s10 + $0xa0] sm:$0xff] %v790_v51  ;;  %v416_v57 = vpop.f32.mrf.mxu0 }
 0x104   : > { %v791_v47 = vadd.f32 %v1193_v60, %v681_v26  ;;  %v417_v58 = vadd.f32 %v416_v57, %v1121_v33 }
 0x106   : > { %v505_v28 = vpop.f32.mrf.mxu1  ;;  %839 = vst [vmem:[%s1268_s10 + $0xa8] sm:$0xff] %v791_v47 }
 0x107   : > { %v506_v52 = vadd.f32 %v505_v28, %v417_v58  ;;  %v594_v31 = vpop.f32.mrf.mxu2 }
 0x108   : > { %v683_v29 = vpop.f32.mrf.mxu3  ;;  %v595_v32 = vadd.f32 %v594_v31, %v1132_v38 }
 0x109   : > { %v792_v44 = vadd.f32 %v1196_v61, %v506_v52 }
 0x10a   : > { %v684_v48 = vadd.f32 %v683_v29, %v595_v32 }
 0x10b   : > { %840 = vst [vmem:[%s1268_s10 + $0xb0] sm:$0xff] %v792_v44  ;;  %v419_v59 = vpop.f32.mrf.mxu0 }
 0x10c   : > { %v793_v34 = vadd.f32 %v1199_v62, %v684_v48  ;;  %v420_v60 = vadd.f32 %v419_v59, %v1121_v33 }
 0x10e   : > { %v508_v41 = vpop.f32.mrf.mxu1  ;;  %841 = vst [vmem:[%s1268_s10 + $0xb8] sm:$0xff] %v793_v34 }
 0x10f   : > { %v509_v30 = vadd.f32 %v508_v41, %v420_v60  ;;  %v597_v53 = vpop.f32.mrf.mxu2 }
 0x110   : > { %v686_v36 = vpop.f32.mrf.mxu3  ;;  %v598_v37 = vadd.f32 %v597_v53, %v1132_v38 }
 0x111   : > { %v794_v54 = vadd.f32 %v1202_v63, %v509_v30 }
 0x112   : > { %v687_v49 = vadd.f32 %v686_v36, %v598_v37 }
 0x113   : > { %842 = vst [vmem:[%s1268_s10 + $0xc0] sm:$0xff] %v794_v54  ;;  %v422_v61 = vpop.f32.mrf.mxu0 }
 0x114   : > { %v795_v45 = vadd.f32 %v1205_v0, %v687_v49  ;;  %v423_v62 = vadd.f32 %v422_v61, %v1121_v33 }
 0x116   : > { %v511_v40 = vpop.f32.mrf.mxu1  ;;  %843 = vst [vmem:[%s1268_s10 + $0xc8] sm:$0xff] %v795_v45 }
 0x117   : > { %v512_v39 = vadd.f32 %v511_v40, %v423_v62  ;;  %v600_v42 = vpop.f32.mrf.mxu2 }
 0x118   : > { %v689_v35 = vpop.f32.mrf.mxu3  ;;  %v601_v50 = vadd.f32 %v600_v42, %v1132_v38 }
 0x119   : > { %v796_v55 = vadd.f32 %v1208_v1, %v512_v39 }
 0x11a   : > { %v690_v17 = vadd.f32 %v689_v35, %v601_v50 }
 0x11b   : > { %844 = vst [vmem:[%s1268_s10 + $0xd0] sm:$0xff] %v796_v55  ;;  %v425_v63 = vpop.f32.mrf.mxu0 }
 0x11c   : > { %v797_v56 = vadd.f32 %v1211_v2, %v690_v17  ;;  %v426_v0 = vadd.f32 %v425_v63, %v1121_v33 }
 0x11e   : > { %v514_v46 = vpop.f32.mrf.mxu1  ;;  %845 = vst [vmem:[%s1268_s10 + $0xd8] sm:$0xff] %v797_v56 }
 0x11f   : > { %v515_v21 = vadd.f32 %v514_v46, %v426_v0  ;;  %v603_v22 = vpop.f32.mrf.mxu2 }
 0x120   : > { %v692_v27 = vpop.f32.mrf.mxu3  ;;  %v604_v43 = vadd.f32 %v603_v22, %v1132_v38 }
 0x121   : > { %v798_v51 = vadd.f32 %v1214_v3, %v515_v21 }
 0x122   : > { %v693_v26 = vadd.f32 %v692_v27, %v604_v43 }
 0x123   : > { %846 = vst [vmem:[%s1268_s10 + $0xe0] sm:$0xff] %v798_v51  ;;  %v428_v1 = vpop.f32.mrf.mxu0 }
 0x124   : > { %v799_v57 = vadd.f32 %v1217_v4, %v693_v26  ;;  %v429_v2 = vadd.f32 %v428_v1, %v1121_v33 }
 0x126   : > { %v517_v47 = vpop.f32.mrf.mxu1  ;;  %847 = vst [vmem:[%s1268_s10 + $0xe8] sm:$0xff] %v799_v57 }
 0x127   : > { %v518_v58 = vadd.f32 %v517_v47, %v429_v2  ;;  %v606_v28 = vpop.f32.mrf.mxu2 }
 0x128   : > { %v695_v52 = vpop.f32.mrf.mxu3  ;;  %v607_v31 = vadd.f32 %v606_v28, %v1132_v38 }
 0x129   : > { %v800_v29 = vadd.f32 %v1220_v5, %v518_v58 }
 0x12a   : > { %v696_v32 = vadd.f32 %v695_v52, %v607_v31 }
 0x12b   : > { %848 = vst [vmem:[%s1268_s10 + $0xf0] sm:$0xff] %v800_v29  ;;  %v431_v3 = vpop.f32.mrf.mxu0 }
 0x12c   : > { %v801_v44 = vadd.f32 %v1223_v6, %v696_v32  ;;  %v432_v4 = vadd.f32 %v431_v3, %v1121_v33 }
 0x12e   : > { %v520_v48 = vpop.f32.mrf.mxu1  ;;  %849 = vst [vmem:[%s1268_s10 + $0xf8] sm:$0xff] %v801_v44 }
 0x12f   : > { %v521_v59 = vadd.f32 %v520_v48, %v432_v4  ;;  %v609_v34 = vpop.f32.mrf.mxu2 }
 0x130   : > { %v698_v60 = vpop.f32.mrf.mxu3  ;;  %v610_v41 = vadd.f32 %v609_v34, %v1132_v38 }
 0x131   : > { %v802_v30 = vadd.f32 %v1226_v7, %v521_v59 }
 0x132   : > { %v699_v53 = vadd.f32 %v698_v60, %v610_v41 }
 0x133   : > { %850 = vst [vmem:[%s1268_s10 + $0x100] sm:$0xff] %v802_v30  ;;  %v434_v5 = vpop.f32.mrf.mxu0 }
 0x134   : > { %v803_v36 = vadd.f32 %v1229_v8, %v699_v53  ;;  %v435_v6 = vadd.f32 %v434_v5, %v1121_v33 }
 0x136   : > { %v523_v37 = vpop.f32.mrf.mxu1  ;;  %851 = vst [vmem:[%s1268_s10 + $0x108] sm:$0xff] %v803_v36 }
 0x137   : > { %v524_v54 = vadd.f32 %v523_v37, %v435_v6  ;;  %v612_v49 = vpop.f32.mrf.mxu2 }
 0x138   : > { %v701_v61 = vpop.f32.mrf.mxu3  ;;  %v613_v45 = vadd.f32 %v612_v49, %v1132_v38 }
 0x139   : > { %v804_v62 = vadd.f32 %v1232_v9, %v524_v54 }
 0x13a   : > { %v702_v40 = vadd.f32 %v701_v61, %v613_v45 }
 0x13b   : > { %852 = vst [vmem:[%s1268_s10 + $0x110] sm:$0xff] %v804_v62  ;;  %v437_v7 = vpop.f32.mrf.mxu0 }
 0x13c   : > { %v805_v39 = vadd.f32 %v1235_v10, %v702_v40  ;;  %v438_v8 = vadd.f32 %v437_v7, %v1121_v33 }
 0x13e   : > { %v526_v42 = vpop.f32.mrf.mxu1  ;;  %853 = vst [vmem:[%s1268_s10 + $0x118] sm:$0xff] %v805_v39 }
 0x13f   : > { %v527_v35 = vadd.f32 %v526_v42, %v438_v8  ;;  %v615_v50 = vpop.f32.mrf.mxu2 }
 0x140   : > { %v704_v55 = vpop.f32.mrf.mxu3  ;;  %v616_v17 = vadd.f32 %v615_v50, %v1132_v38 }
 0x141   : > { %v806_v63 = vadd.f32 %v1238_v11, %v527_v35 }
 0x142   : > { %v705_v56 = vadd.f32 %v704_v55, %v616_v17 }
 0x143   : > { %854 = vst [vmem:[%s1268_s10 + $0x120] sm:$0xff] %v806_v63  ;;  %v440_v9 = vpop.f32.mrf.mxu0 }
 0x144   : > { %v807_v0 = vadd.f32 %v1241_v12, %v705_v56  ;;  %v441_v10 = vadd.f32 %v440_v9, %v1121_v33 }
 0x146   : > { %v529_v46 = vpop.f32.mrf.mxu1  ;;  %855 = vst [vmem:[%s1268_s10 + $0x128] sm:$0xff] %v807_v0 }
 0x147   : > { %v530_v21 = vadd.f32 %v529_v46, %v441_v10  ;;  %v618_v22 = vpop.f32.mrf.mxu2 }
 0x148   : > { %v707_v27 = vpop.f32.mrf.mxu3  ;;  %v619_v43 = vadd.f32 %v618_v22, %v1132_v38 }
 0x149   : > { %v808_v51 = vadd.f32 %v1244_v13, %v530_v21 }
 0x14a   : > { %v708_v26 = vadd.f32 %v707_v27, %v619_v43 }
 0x14b   : > { %856 = vst [vmem:[%s1268_s10 + $0x130] sm:$0xff] %v808_v51  ;;  %v443_v11 = vpop.f32.mrf.mxu0 }
 0x14c   : > { %v809_v1 = vadd.f32 %v1247_v14, %v708_v26  ;;  %v444_v12 = vadd.f32 %v443_v11, %v1121_v33 }
 0x14e   : > { %v532_v57 = vpop.f32.mrf.mxu1  ;;  %857 = vst [vmem:[%s1268_s10 + $0x138] sm:$0xff] %v809_v1 }
 0x14f   : > { %v533_v2 = vadd.f32 %v532_v57, %v444_v12  ;;  %v621_v47 = vpop.f32.mrf.mxu2 }
 0x150   : > { %v710_v58 = vpop.f32.mrf.mxu3  ;;  %v622_v28 = vadd.f32 %v621_v47, %v1132_v38 }
 0x151   : > { %v810_v52 = vadd.f32 %v1250_v15, %v533_v2 }
 0x152   : > { %v711_v31 = vadd.f32 %v710_v58, %v622_v28 }
 0x153   : > { %858 = vst [vmem:[%s1268_s10 + $0x140] sm:$0xff] %v810_v52  ;;  %v446_v13 = vpop.f32.mrf.mxu0 }
 0x154   : > { %v811_v29 = vadd.f32 %v1253_v16, %v711_v31  ;;  %v447_v14 = vadd.f32 %v446_v13, %v1121_v33 }
 0x156   : > { %v535_v32 = vpop.f32.mrf.mxu1  ;;  %859 = vst [vmem:[%s1268_s10 + $0x148] sm:$0xff] %v811_v29 }
 0x157   : > { %v536_v3 = vadd.f32 %v535_v32, %v447_v14  ;;  %v624_v44 = vpop.f32.mrf.mxu2 }
 0x158   : > { %v713_v4 = vpop.f32.mrf.mxu3  ;;  %v625_v48 = vadd.f32 %v624_v44, %v1132_v38 }
 0x159   : > { %v812_v59 = vadd.f32 %v1256_v18, %v536_v3 }
 0x15a   : > { %v714_v34 = vadd.f32 %v713_v4, %v625_v48 }
 0x15b   : > { %860 = vst [vmem:[%s1268_s10 + $0x150] sm:$0xff] %v812_v59  ;;  %v449_v15 = vpop.f32.mrf.mxu0 }
 0x15c   : > { %v813_v60 = vadd.f32 %v1259_v19, %v714_v34  ;;  %v450_v16 = vadd.f32 %v449_v15, %v1121_v33 }
 0x15e   : > { %v538_v41 = vpop.f32.mrf.mxu1  ;;  %861 = vst [vmem:[%s1268_s10 + $0x158] sm:$0xff] %v813_v60 }
 0x15f   : > { %v539_v30 = vadd.f32 %v538_v41, %v450_v16  ;;  %v627_v53 = vpop.f32.mrf.mxu2 }
 0x160   : > { %v716_v5 = vpop.f32.mrf.mxu3  ;;  %v628_v36 = vadd.f32 %v627_v53, %v1132_v38 }
 0x161   : > { %v814_v6 = vadd.f32 %v1262_v20, %v539_v30 }
 0x162   : > { %v717_v18 = vadd.f32 %v716_v5, %v628_v36 }
 0x163   : > { %862 = vst [vmem:[%s1268_s10 + $0x160] sm:$0xff] %v814_v6  ;;  %v452_v37 = vpop.f32.mrf.mxu0 }
 0x164   : > { %v815_v54 = vadd.f32 %v1271_v23, %v717_v18  ;;  %v453_v19 = vadd.f32 %v452_v37, %v1121_v33 }
 0x166   : > { %v541_v49 = vpop.f32.mrf.mxu1  ;;  %863 = vst [vmem:[%s1268_s10 + $0x168] sm:$0xff] %v815_v54 }
 0x167   : > { %v542_v61 = vadd.f32 %v541_v49, %v453_v19  ;;  %v630_v45 = vpop.f32.mrf.mxu2 }
 0x168   : > { %v719_v62 = vpop.f32.mrf.mxu3  ;;  %v631_v40 = vadd.f32 %v630_v45, %v1132_v38 }
 0x169   : > { %v816_v7 = vadd.f32 %v1274_v24, %v542_v61 }
 0x16a   : > { %v720_v39 = vadd.f32 %v719_v62, %v631_v40 }
 0x16b   : > { %864 = vst [vmem:[%s1268_s10 + $0x170] sm:$0xff] %v816_v7 }
 0x16c   : > { %v817_v20 = vadd.f32 %v1277_v25, %v720_v39 }
 0x16e   : > { %865 = vst [vmem:[%s1268_s10 + $0x178] sm:$0xff] %v817_v20 }
 0x16f PF: > { %s15_s15 = sadd.s32 1, %s1027_s15  }
 0x170   : > { %p12_p7 = scmp.ge.s32.totalorder %s15_s15, 4  }
 0x172   :  { %14 = sbr.rel (!%p12_p7) target bundleno = 1 (0x1), region = 74 }
 0x177   :  { %890 = vsyncpa [#allocation3], 1 }
 0x178   :  { %892 = vsyncpa [#allocation3 + $0x1], 1 }

</bundles_post_ra>
